<compile_context>
chip_gen: v5e
topology: v5e:2x2
jax: 0.10.0
libtpu: 0.0.40
codegen_flags: <defaults>
</compile_context>

<pallas_src>
import functools

import jax
import jax.numpy as jnp
from jax import lax
from jax.experimental import pallas as pl
from jax.experimental.pallas import tpu as pltpu


_NEG_INIT = -1e30  # finite running-max init: masked tiles never yield NaN


def _flash_attention_kernel(q_ref, k_ref, v_ref, *rest, num_heads, head_dim,
                            softmax_temp, use_mask):
    """One (batch n, q-tile i, kv-tile j) grid step; all heads per step.

    q_ref:  (tq,  H*D) native dtype      o_ref:   (tq, H*D)
    k_ref:  (tkv, H*D) native dtype      m_sc:    (tq, H)  f32 running max
    v_ref:  (tkv, H*D) native dtype      l_sc:    (tq, H)  f32 running denom
    kb_ref: (1, tkv) f32 additive 0/-inf acc_sc:  (tq, H*D) f32 accumulator
    qn_ref: (tq, 1)  f32 additive 0/NaN  (only present when use_mask)
    """
    if use_mask:
        kb_ref, qn_ref, o_ref, m_sc, l_sc, acc_sc = rest
    else:
        kb_ref = qn_ref = None
        o_ref, m_sc, l_sc, acc_sc = rest

    j = pl.program_id(2)

    @pl.when(j == 0)
    def _init():
        m_sc[...] = jnp.full(m_sc.shape, _NEG_INIT, dtype=m_sc.dtype)
        l_sc[...] = jnp.zeros_like(l_sc)
        acc_sc[...] = jnp.zeros_like(acc_sc)

    if use_mask:
        kb = kb_ref[...]                 # (1, tkv) f32 — hoisted once per step

    m_prev = m_sc[...]                   # (tq, H)  one dense load
    l_prev = l_sc[...]                   # (tq, H)
    tq = m_prev.shape[0]
    dot_dt = jnp.bfloat16                # feed the MXU bf16 even for f32 input

    m_new_cols, rowsum_cols, pv_blocks = [], [], []
    for h in range(num_heads):
        sl = slice(h * head_dim, (h + 1) * head_dim)
        # Zero-cost ref views; temp folded into Q; bf16 operands, f32 accum.
        q_h = (q_ref[:, sl] * softmax_temp).astype(dot_dt)       # (tq,  D)
        k_h = k_ref[:, sl].astype(dot_dt)                        # (tkv, D)
        v_h = v_ref[:, sl].astype(dot_dt)                        # (tkv, D)

        # QK^T contracting the last dims (transposed-RHS MXU path, no k.T).
        s = lax.dot_general(q_h, k_h, (((1,), (1,)), ((), ())),
                            preferred_element_type=jnp.float32)  # (tq, tkv)
        if use_mask:
            s = s + kb    # kv mask only; q-row mask is applied at finalize

        m_h = jnp.maximum(m_prev[:, h:h + 1],
                          jnp.max(s, axis=-1, keepdims=True))    # (tq, 1)
        p = jnp.exp(s - m_h)                                     # (tq, tkv) f32
        m_new_cols.append(m_h)
        rowsum_cols.append(jnp.sum(p, axis=-1, keepdims=True))   # (tq, 1)

        pv_blocks.append(
            lax.dot_general(p.astype(dot_dt), v_h, (((1,), (0,)), ((), ())),
                            preferred_element_type=jnp.float32)) # (tq, D)

    # Batched online-softmax state update: one small exp, dense (tq, H) stores.
    m_new = jnp.concatenate(m_new_cols, axis=1)                  # (tq, H)
    rowsum = jnp.concatenate(rowsum_cols, axis=1)                # (tq, H)
    alpha = jnp.exp(m_prev - m_new)                              # (tq, H)
    m_sc[...] = m_new
    l_sc[...] = alpha * l_prev + rowsum

    # Single full-width, lane-dense accumulator update.
    alpha_full = jnp.concatenate(
        [jnp.broadcast_to(alpha[:, h:h + 1], (tq, head_dim))
         for h in range(num_heads)], axis=1)                     # (tq, H*D)
    pv_full = jnp.concatenate(pv_blocks, axis=1)                 # (tq, H*D)
    acc_sc[...] = alpha_full * acc_sc[...] + pv_full

    @pl.when(j == pl.num_programs(2) - 1)
    def _finalize():
        inv_l = pl.reciprocal(l_sc[...], approx=True)            # (tq, H) EUP
        inv_full = jnp.concatenate(
            [jnp.broadcast_to(inv_l[:, h:h + 1], (tq, head_dim))
             for h in range(num_heads)], axis=1)                 # (tq, H*D)
        out = acc_sc[...] * inv_full
        if use_mask:
            # Masked query rows -> NaN, matching PyTorch softmax of all -inf.
            out = out + qn_ref[...]
        o_ref[...] = out.astype(o_ref.dtype)


def _pick_tile(dim, candidates, parallel_other=None, min_slices=2):
    """Largest candidate that evenly divides `dim`.

    If `parallel_other` is given, prefer a tile leaving at least `min_slices`
    parallel grid slices (keeps both v7x TensorCores busy); otherwise / if
    impossible, fall back to the largest divisor, then to the full extent.
    """
    fallback = None
    for c in candidates:
        if c <= dim and dim % c == 0:
            if fallback is None:
                fallback = c
            if parallel_other is None or parallel_other * (dim // c) >= min_slices:
                return c
    return fallback if fallback is not None else dim


def full_attention(queries, keys, values, q_mask=None, kv_mask=None):
    """Pallas TPU implementation of FullAttention.forward.

    queries: [N, L, H, D]; keys/values: [N, S, H, D];
    q_mask: [N, L] (bool/{0,1}) or None; kv_mask: [N, S] or None.
    Returns queried_values: [N, L, H, D] (same dtype as queries).
    Note: as in the PyTorch module, q_mask is ignored when kv_mask is None.
    """
    N, L, H, D = queries.shape
    S = keys.shape[1]
    HD = H * D
    softmax_temp = 1.0 / (D ** 0.5)

    # Copy-free merges of the trailing (H, D) dims -> lane-dense [*, H*D].
    q3 = queries.reshape(N, L, HD)
    k3 = keys.reshape(N, S, HD)
    v3 = values.reshape(N, S, HD)

    # tq: multiple of 8 (sublane rule), preferring >=2 parallel grid slices;
    # tkv: multiple of 128 (lane rule for the [N, 1, S] bias block); otherwise
    # fall back to the full extent.
    tq = _pick_tile(L, (512, 256, 128, 64, 32, 16, 8), parallel_other=N)
    tkv = _pick_tile(S, (2048, 1024, 512, 256, 128))
    grid = (N, L // tq, S // tkv)

    use_mask = kv_mask is not None
    operands = [q3, k3, v3]
    in_specs = [
        pl.BlockSpec((None, tq, HD), lambda n, i, j: (n, i, 0)),    # q
        pl.BlockSpec((None, tkv, HD), lambda n, i, j: (n, j, 0)),   # k
        pl.BlockSpec((None, tkv, HD), lambda n, i, j: (n, j, 0)),   # v
    ]
    if use_mask:
        km = kv_mask.astype(jnp.bool_)
        kv_bias = jnp.where(km[:, None, :], 0.0, -jnp.inf).astype(jnp.float32)
        qm = (jnp.ones((N, L), jnp.bool_) if q_mask is None
              else q_mask.astype(jnp.bool_))
        # 0 for valid query rows, NaN for masked rows (applied at finalize).
        q_nan = jnp.where(qm[:, :, None], 0.0, jnp.nan).astype(jnp.float32)
        operands += [kv_bias, q_nan]
        in_specs += [
            pl.BlockSpec((None, 1, tkv), lambda n, i, j: (n, 0, j)),  # kv bias
            pl.BlockSpec((None, tq, 1), lambda n, i, j: (n, i, 0)),   # q 0/NaN
        ]

    kernel = functools.partial(
        _flash_attention_kernel, num_heads=H, head_dim=D,
        softmax_temp=softmax_temp, use_mask=use_mask)

    itemsize = jnp.dtype(queries.dtype).itemsize
    kv_restreams = L // tq   # K/V are re-streamed once per q tile
    cost = pl.CostEstimate(
        flops=4 * N * H * L * S * D,
        transcendentals=N * H * L * S,
        bytes_accessed=(2 * N * L * HD
                        + 2 * N * S * HD * kv_restreams) * itemsize)

    grid_spec = pltpu.PrefetchScalarGridSpec(
        num_scalar_prefetch=0,
        grid=grid,
        in_specs=in_specs,
        out_specs=pl.BlockSpec((None, tq, HD), lambda n, i, j: (n, i, 0)),
        scratch_shapes=[
            pltpu.VMEM((tq, H), jnp.float32),     # running max per head
            pltpu.VMEM((tq, H), jnp.float32),     # running denom per head
            pltpu.VMEM((tq, HD), jnp.float32),    # output accumulator
        ],
    )

    out3 = pl.pallas_call(
        kernel,
        out_shape=jax.ShapeDtypeStruct((N, L, HD), queries.dtype),
        grid_spec=grid_spec,
        compiler_params=pltpu.CompilerParams(
            dimension_semantics=("parallel", "parallel", "arbitrary"),
            vmem_limit_bytes=48 * 1024 * 1024),
        cost_estimate=cost,
    )(*operands)

    return out3.reshape(N, L, H, D)


def _reference_full_attention(queries, keys, values, q_mask=None, kv_mask=None):
    """Pure-JAX reference mirroring the PyTorch module."""
    qk = jnp.einsum('nlhd,nshd->nlsh',
                    queries.astype(jnp.float32), keys.astype(jnp.float32))
    if kv_mask is not None:
        m = (q_mask[:, :, None, None].astype(bool)
             & kv_mask[:, None, :, None].astype(bool))
        qk = jnp.where(m, qk, -jnp.inf)
    temp = 1.0 / (queries.shape[3] ** 0.5)
    a = jax.nn.softmax(temp * qk, axis=2)
    return jnp.einsum('nlsh,nshd->nlhd', a, values.astype(jnp.float32))


if __name__ == "__main__":
    key = jax.random.PRNGKey(0)
    kq, kk, kv, kq2, kk2, kv2 = jax.random.split(key, 6)

    # --- Small config (single tile per axis) ------------------------------
    N, L, S, H, D = 2, 8, 8, 4, 32
    queries = jax.random.normal(kq, (N, L, H, D), dtype=jnp.float32)
    keys = jax.random.normal(kk, (N, S, H, D), dtype=jnp.float32)
    values = jax.random.normal(kv, (N, S, H, D), dtype=jnp.float32)
    q_mask = jnp.ones((N, L), dtype=jnp.bool_)
    kv_mask = jnp.concatenate(
        [jnp.ones((N, S - 2), dtype=jnp.bool_),
         jnp.zeros((N, 2), dtype=jnp.bool_)], axis=1)

    out = jax.block_until_ready(full_attention(queries, keys, values))
    ref = _reference_full_attention(queries, keys, values)
    assert out.shape == (N, L, H, D)
    assert jnp.allclose(out, ref, atol=2e-2, rtol=2e-2), "unmasked mismatch"

    out_m = jax.block_until_ready(
        full_attention(queries, keys, values, q_mask=q_mask, kv_mask=kv_mask))
    ref_m = _reference_full_attention(queries, keys, values,
                                      q_mask=q_mask, kv_mask=kv_mask)
    assert jnp.allclose(out_m, ref_m, atol=2e-2, rtol=2e-2), "masked mismatch"

    # --- Multi-tile config: exercises the online softmax across kv tiles ---
    N2, L2, S2, H2, D2 = 1, 384, 384, 4, 32   # tq = tkv = 128 -> 3x3 tiles
    q_b = jax.random.normal(kq2, (N2, L2, H2, D2), dtype=jnp.float32)
    k_b = jax.random.normal(kk2, (N2, S2, H2, D2), dtype=jnp.float32)
    v_b = jax.random.normal(kv2, (N2, S2, H2, D2), dtype=jnp.float32)
    qm_b = jnp.ones((N2, L2), dtype=jnp.bool_)
    kvm_b = jnp.ones((N2, S2), dtype=jnp.bool_)
    kvm_b = kvm_b.at[:, 128:256].set(False)   # one kv tile fully masked
    kvm_b = kvm_b.at[:, 380:].set(False)      # plus a partially-masked tail

    out_b = jax.block_until_ready(
        full_attention(q_b, k_b, v_b, q_mask=qm_b, kv_mask=kvm_b))
    ref_b = _reference_full_attention(q_b, k_b, v_b, q_mask=qm_b, kv_mask=kvm_b)
    assert jnp.allclose(out_b, ref_b, atol=2e-2, rtol=2e-2), "multi-tile mismatch"

    # --- bf16 smoke run (native-dtype MXU path) ----------------------------
    out_bf16 = jax.block_until_ready(
        full_attention(queries.astype(jnp.bfloat16), keys.astype(jnp.bfloat16),
                       values.astype(jnp.bfloat16),
                       q_mask=q_mask, kv_mask=kv_mask))
    assert out_bf16.dtype == jnp.bfloat16
    assert bool(jnp.all(jnp.isfinite(out_bf16.astype(jnp.float32))))

    print("KERNEL_OK")
</pallas_src>

<mosaic_0001>
module attributes {stable_mosaic.version = 11 : i64} {
  func.func @_flash_attention_kernel(%arg0: i32, %arg1: i32, %arg2: i32, %arg3: memref<1x8x128xf32, #tpu.memory_space<vmem>>, %arg4: memref<1x8x128xf32, #tpu.memory_space<vmem>>, %arg5: memref<1x8x128xf32, #tpu.memory_space<vmem>>, %arg6: memref<1x8x128xf32, #tpu.memory_space<vmem>>, %arg7: memref<8x4xf32, #tpu.memory_space<vmem>>, %arg8: memref<8x4xf32, #tpu.memory_space<vmem>>, %arg9: memref<8x128xf32, #tpu.memory_space<vmem>>) attributes {dimension_semantics = [#tpu.dimension_semantics<parallel>, #tpu.dimension_semantics<parallel>, #tpu.dimension_semantics<arbitrary>], iteration_bounds = array<i64: 2, 1, 1>, scalar_prefetch = 0 : i64, scratch_operands = 3 : i64, tpu.core_type = #tpu.core_type<tc>, window_params = [{transform_indices = @transform_0, window_bounds = array<i64: 1, 8, 128>}, {transform_indices = @transform_1, window_bounds = array<i64: 1, 8, 128>}, {transform_indices = @transform_2, window_bounds = array<i64: 1, 8, 128>}, {transform_indices = @transform_3, window_bounds = array<i64: 1, 8, 128>}]} {
    %c0_i32 = arith.constant 0 : i32
    %0 = arith.cmpi eq, %arg2, %c0_i32 : i32
    %1 = arith.extui %0 : i1 to i32
    %c0_i32_0 = arith.constant 0 : i32
    %2 = arith.cmpi ne, %1, %c0_i32_0 : i32
    scf.if %2 {
      %cst_66 = arith.constant -1.000000e+30 : f32
      %126 = vector.broadcast %cst_66 : f32 to vector<8x4xf32>
      %c0_67 = arith.constant 0 : index
      %c0_68 = arith.constant 0 : index
      %127 = vector.load %arg7[%c0_67, %c0_68] : memref<8x4xf32, #tpu.memory_space<vmem>>, vector<8x4xf32>
      tpu.vector_store %arg7[%c0_67, %c0_68], %126 {strides = array<i32>} : memref<8x4xf32, #tpu.memory_space<vmem>>, vector<8x4xf32>,
      %cst_69 = arith.constant 0.000000e+00 : f32
      %128 = vector.broadcast %cst_69 : f32 to vector<8x4xf32>
      %c0_70 = arith.constant 0 : index
      %c0_71 = arith.constant 0 : index
      %129 = vector.load %arg8[%c0_70, %c0_71] : memref<8x4xf32, #tpu.memory_space<vmem>>, vector<8x4xf32>
      tpu.vector_store %arg8[%c0_70, %c0_71], %128 {strides = array<i32>} : memref<8x4xf32, #tpu.memory_space<vmem>>, vector<8x4xf32>,
      %cst_72 = arith.constant 0.000000e+00 : f32
      %130 = vector.broadcast %cst_72 : f32 to vector<8x128xf32>
      %c0_73 = arith.constant 0 : index
      %c0_74 = arith.constant 0 : index
      %131 = vector.load %arg9[%c0_73, %c0_74] : memref<8x128xf32, #tpu.memory_space<vmem>>, vector<8x128xf32>
      tpu.vector_store %arg9[%c0_73, %c0_74], %130 {strides = array<i32>} : memref<8x128xf32, #tpu.memory_space<vmem>>, vector<8x128xf32>,
    } else {
    }
    %c0 = arith.constant 0 : index
    %c0_1 = arith.constant 0 : index
    %3 = vector.load %arg7[%c0, %c0_1] : memref<8x4xf32, #tpu.memory_space<vmem>>, vector<8x4xf32>
    %c0_2 = arith.constant 0 : index
    %c0_3 = arith.constant 0 : index
    %4 = vector.load %arg8[%c0_2, %c0_3] : memref<8x4xf32, #tpu.memory_space<vmem>>, vector<8x4xf32>
    %c0_4 = arith.constant 0 : index
    %c0_5 = arith.constant 0 : index
    %c0_6 = arith.constant 0 : index
    %5 = vector.load %arg3[%c0_4, %c0_5, %c0_6] : memref<1x8x128xf32, #tpu.memory_space<vmem>>, vector<1x8x32xf32>
    %6 = vector.shape_cast %5 : vector<1x8x32xf32> to vector<8x32xf32>
    %cst = arith.constant 0.176776692 : f32
    %7 = vector.broadcast %cst : f32 to vector<8x32xf32>
    %8 = arith.mulf %6, %7 : vector<8x32xf32>
    %9 = arith.truncf %8 : vector<8x32xf32> to vector<8x32xbf16>
    %c0_7 = arith.constant 0 : index
    %c0_8 = arith.constant 0 : index
    %c0_9 = arith.constant 0 : index
    %10 = vector.load %arg4[%c0_7, %c0_8, %c0_9] : memref<1x8x128xf32, #tpu.memory_space<vmem>>, vector<1x8x32xf32>
    %11 = vector.shape_cast %10 : vector<1x8x32xf32> to vector<8x32xf32>
    %12 = arith.truncf %11 : vector<8x32xf32> to vector<8x32xbf16>
    %c0_10 = arith.constant 0 : index
    %c0_11 = arith.constant 0 : index
    %c0_12 = arith.constant 0 : index
    %13 = vector.load %arg5[%c0_10, %c0_11, %c0_12] : memref<1x8x128xf32, #tpu.memory_space<vmem>>, vector<1x8x32xf32>
    %14 = vector.shape_cast %13 : vector<1x8x32xf32> to vector<8x32xf32>
    %15 = arith.truncf %14 : vector<8x32xf32> to vector<8x32xbf16>
    %cst_13 = arith.constant dense<0.000000e+00> : vector<8x8xf32>
    %16 = tpu.matmul %9, %12, %cst_13 {dimension_numbers = #tpu.dot_dimension_numbers<[1], [1], [0], [0], [0, 0, 1, 0], [], []>} : vector<8x32xbf16>, vector<8x32xbf16>, vector<8x8xf32> -> vector<8x8xf32>
    %17 = vector.extract_strided_slice %3 {offsets = [0, 0], sizes = [8, 1], strides = [1, 1]} : vector<8x4xf32> to vector<8x1xf32>
    %cst_14 = arith.constant dense<0xFF800000> : vector<8xf32>
    %18 = vector.multi_reduction <maximumf>, %16, %cst_14 [1] : vector<8x8xf32> to vector<8xf32>
    %19 = vector.shape_cast %18 : vector<8xf32> to vector<8x1xf32>
    %20 = arith.maximumf %17, %19 : vector<8x1xf32>
    %21 = vector.broadcast %20 : vector<8x1xf32> to vector<8x8xf32>
    %22 = arith.subf %16, %21 : vector<8x8xf32>
    %23 = math.exp %22 : vector<8x8xf32>
    %cst_15 = arith.constant dense<0.000000e+00> : vector<8xf32>
    %24 = vector.multi_reduction <add>, %23, %cst_15 [1] : vector<8x8xf32> to vector<8xf32>
    %25 = vector.shape_cast %24 : vector<8xf32> to vector<8x1xf32>
    %26 = arith.truncf %23 : vector<8x8xf32> to vector<8x8xbf16>
    %cst_16 = arith.constant dense<0.000000e+00> : vector<8x32xf32>
    %27 = tpu.matmul %26, %15, %cst_16 {dimension_numbers = #tpu.dot_dimension_numbers<[1], [0], [0], [1], [0, 0, 1, 1], [], []>} : vector<8x8xbf16>, vector<8x32xbf16>, vector<8x32xf32> -> vector<8x32xf32>
    %c0_17 = arith.constant 0 : index
    %c0_18 = arith.constant 0 : index
    %c32 = arith.constant 32 : index
    %28 = vector.load %arg3[%c0_17, %c0_18, %c32] : memref<1x8x128xf32, #tpu.memory_space<vmem>>, vector<1x8x32xf32>
    %29 = vector.shape_cast %28 : vector<1x8x32xf32> to vector<8x32xf32>
    %cst_19 = arith.constant 0.176776692 : f32
    %30 = vector.broadcast %cst_19 : f32 to vector<8x32xf32>
    %31 = arith.mulf %29, %30 : vector<8x32xf32>
    %32 = arith.truncf %31 : vector<8x32xf32> to vector<8x32xbf16>
    %c0_20 = arith.constant 0 : index
    %c0_21 = arith.constant 0 : index
    %c32_22 = arith.constant 32 : index
    %33 = vector.load %arg4[%c0_20, %c0_21, %c32_22] : memref<1x8x128xf32, #tpu.memory_space<vmem>>, vector<1x8x32xf32>
    %34 = vector.shape_cast %33 : vector<1x8x32xf32> to vector<8x32xf32>
    %35 = arith.truncf %34 : vector<8x32xf32> to vector<8x32xbf16>
    %c0_23 = arith.constant 0 : index
    %c0_24 = arith.constant 0 : index
    %c32_25 = arith.constant 32 : index
    %36 = vector.load %arg5[%c0_23, %c0_24, %c32_25] : memref<1x8x128xf32, #tpu.memory_space<vmem>>, vector<1x8x32xf32>
    %37 = vector.shape_cast %36 : vector<1x8x32xf32> to vector<8x32xf32>
    %38 = arith.truncf %37 : vector<8x32xf32> to vector<8x32xbf16>
    %cst_26 = arith.constant dense<0.000000e+00> : vector<8x8xf32>
    %39 = tpu.matmul %32, %35, %cst_26 {dimension_numbers = #tpu.dot_dimension_numbers<[1], [1], [0], [0], [0, 0, 1, 0], [], []>} : vector<8x32xbf16>, vector<8x32xbf16>, vector<8x8xf32> -> vector<8x8xf32>
    %40 = vector.extract_strided_slice %3 {offsets = [0, 1], sizes = [8, 1], strides = [1, 1]} : vector<8x4xf32> to vector<8x1xf32>
    %cst_27 = arith.constant dense<0xFF800000> : vector<8xf32>
    %41 = vector.multi_reduction <maximumf>, %39, %cst_27 [1] : vector<8x8xf32> to vector<8xf32>
    %42 = vector.shape_cast %41 : vector<8xf32> to vector<8x1xf32>
    %43 = arith.maximumf %40, %42 : vector<8x1xf32>
    %44 = vector.broadcast %43 : vector<8x1xf32> to vector<8x8xf32>
    %45 = arith.subf %39, %44 : vector<8x8xf32>
    %46 = math.exp %45 : vector<8x8xf32>
    %cst_28 = arith.constant dense<0.000000e+00> : vector<8xf32>
    %47 = vector.multi_reduction <add>, %46, %cst_28 [1] : vector<8x8xf32> to vector<8xf32>
    %48 = vector.shape_cast %47 : vector<8xf32> to vector<8x1xf32>
    %49 = arith.truncf %46 : vector<8x8xf32> to vector<8x8xbf16>
    %cst_29 = arith.constant dense<0.000000e+00> : vector<8x32xf32>
    %50 = tpu.matmul %49, %38, %cst_29 {dimension_numbers = #tpu.dot_dimension_numbers<[1], [0], [0], [1], [0, 0, 1, 1], [], []>} : vector<8x8xbf16>, vector<8x32xbf16>, vector<8x32xf32> -> vector<8x32xf32>
    %c0_30 = arith.constant 0 : index
    %c0_31 = arith.constant 0 : index
    %c64 = arith.constant 64 : index
    %51 = vector.load %arg3[%c0_30, %c0_31, %c64] : memref<1x8x128xf32, #tpu.memory_space<vmem>>, vector<1x8x32xf32>
    %52 = vector.shape_cast %51 : vector<1x8x32xf32> to vector<8x32xf32>
    %cst_32 = arith.constant 0.176776692 : f32
    %53 = vector.broadcast %cst_32 : f32 to vector<8x32xf32>
    %54 = arith.mulf %52, %53 : vector<8x32xf32>
    %55 = arith.truncf %54 : vector<8x32xf32> to vector<8x32xbf16>
    %c0_33 = arith.constant 0 : index
    %c0_34 = arith.constant 0 : index
    %c64_35 = arith.constant 64 : index
    %56 = vector.load %arg4[%c0_33, %c0_34, %c64_35] : memref<1x8x128xf32, #tpu.memory_space<vmem>>, vector<1x8x32xf32>
    %57 = vector.shape_cast %56 : vector<1x8x32xf32> to vector<8x32xf32>
    %58 = arith.truncf %57 : vector<8x32xf32> to vector<8x32xbf16>
    %c0_36 = arith.constant 0 : index
    %c0_37 = arith.constant 0 : index
    %c64_38 = arith.constant 64 : index
    %59 = vector.load %arg5[%c0_36, %c0_37, %c64_38] : memref<1x8x128xf32, #tpu.memory_space<vmem>>, vector<1x8x32xf32>
    %60 = vector.shape_cast %59 : vector<1x8x32xf32> to vector<8x32xf32>
    %61 = arith.truncf %60 : vector<8x32xf32> to vector<8x32xbf16>
    %cst_39 = arith.constant dense<0.000000e+00> : vector<8x8xf32>
    %62 = tpu.matmul %55, %58, %cst_39 {dimension_numbers = #tpu.dot_dimension_numbers<[1], [1], [0], [0], [0, 0, 1, 0], [], []>} : vector<8x32xbf16>, vector<8x32xbf16>, vector<8x8xf32> -> vector<8x8xf32>
    %63 = vector.extract_strided_slice %3 {offsets = [0, 2], sizes = [8, 1], strides = [1, 1]} : vector<8x4xf32> to vector<8x1xf32>
    %cst_40 = arith.constant dense<0xFF800000> : vector<8xf32>
    %64 = vector.multi_reduction <maximumf>, %62, %cst_40 [1] : vector<8x8xf32> to vector<8xf32>
    %65 = vector.shape_cast %64 : vector<8xf32> to vector<8x1xf32>
    %66 = arith.maximumf %63, %65 : vector<8x1xf32>
    %67 = vector.broadcast %66 : vector<8x1xf32> to vector<8x8xf32>
    %68 = arith.subf %62, %67 : vector<8x8xf32>
    %69 = math.exp %68 : vector<8x8xf32>
    %cst_41 = arith.constant dense<0.000000e+00> : vector<8xf32>
    %70 = vector.multi_reduction <add>, %69, %cst_41 [1] : vector<8x8xf32> to vector<8xf32>
    %71 = vector.shape_cast %70 : vector<8xf32> to vector<8x1xf32>
    %72 = arith.truncf %69 : vector<8x8xf32> to vector<8x8xbf16>
    %cst_42 = arith.constant dense<0.000000e+00> : vector<8x32xf32>
    %73 = tpu.matmul %72, %61, %cst_42 {dimension_numbers = #tpu.dot_dimension_numbers<[1], [0], [0], [1], [0, 0, 1, 1], [], []>} : vector<8x8xbf16>, vector<8x32xbf16>, vector<8x32xf32> -> vector<8x32xf32>
    %c0_43 = arith.constant 0 : index
    %c0_44 = arith.constant 0 : index
    %c96 = arith.constant 96 : index
    %74 = vector.load %arg3[%c0_43, %c0_44, %c96] : memref<1x8x128xf32, #tpu.memory_space<vmem>>, vector<1x8x32xf32>
    %75 = vector.shape_cast %74 : vector<1x8x32xf32> to vector<8x32xf32>
    %cst_45 = arith.constant 0.176776692 : f32
    %76 = vector.broadcast %cst_45 : f32 to vector<8x32xf32>
    %77 = arith.mulf %75, %76 : vector<8x32xf32>
    %78 = arith.truncf %77 : vector<8x32xf32> to vector<8x32xbf16>
    %c0_46 = arith.constant 0 : index
    %c0_47 = arith.constant 0 : index
    %c96_48 = arith.constant 96 : index
    %79 = vector.load %arg4[%c0_46, %c0_47, %c96_48] : memref<1x8x128xf32, #tpu.memory_space<vmem>>, vector<1x8x32xf32>
    %80 = vector.shape_cast %79 : vector<1x8x32xf32> to vector<8x32xf32>
    %81 = arith.truncf %80 : vector<8x32xf32> to vector<8x32xbf16>
    %c0_49 = arith.constant 0 : index
    %c0_50 = arith.constant 0 : index
    %c96_51 = arith.constant 96 : index
    %82 = vector.load %arg5[%c0_49, %c0_50, %c96_51] : memref<1x8x128xf32, #tpu.memory_space<vmem>>, vector<1x8x32xf32>
    %83 = vector.shape_cast %82 : vector<1x8x32xf32> to vector<8x32xf32>
    %84 = arith.truncf %83 : vector<8x32xf32> to vector<8x32xbf16>
    %cst_52 = arith.constant dense<0.000000e+00> : vector<8x8xf32>
    %85 = tpu.matmul %78, %81, %cst_52 {dimension_numbers = #tpu.dot_dimension_numbers<[1], [1], [0], [0], [0, 0, 1, 0], [], []>} : vector<8x32xbf16>, vector<8x32xbf16>, vector<8x8xf32> -> vector<8x8xf32>
    %86 = vector.extract_strided_slice %3 {offsets = [0, 3], sizes = [8, 1], strides = [1, 1]} : vector<8x4xf32> to vector<8x1xf32>
    %cst_53 = arith.constant dense<0xFF800000> : vector<8xf32>
    %87 = vector.multi_reduction <maximumf>, %85, %cst_53 [1] : vector<8x8xf32> to vector<8xf32>
    %88 = vector.shape_cast %87 : vector<8xf32> to vector<8x1xf32>
    %89 = arith.maximumf %86, %88 : vector<8x1xf32>
    %90 = vector.broadcast %89 : vector<8x1xf32> to vector<8x8xf32>
    %91 = arith.subf %85, %90 : vector<8x8xf32>
    %92 = math.exp %91 : vector<8x8xf32>
    %cst_54 = arith.constant dense<0.000000e+00> : vector<8xf32>
    %93 = vector.multi_reduction <add>, %92, %cst_54 [1] : vector<8x8xf32> to vector<8xf32>
    %94 = vector.shape_cast %93 : vector<8xf32> to vector<8x1xf32>
    %95 = arith.truncf %92 : vector<8x8xf32> to vector<8x8xbf16>
    %cst_55 = arith.constant dense<0.000000e+00> : vector<8x32xf32>
    %96 = tpu.matmul %95, %84, %cst_55 {dimension_numbers = #tpu.dot_dimension_numbers<[1], [0], [0], [1], [0, 0, 1, 1], [], []>} : vector<8x8xbf16>, vector<8x32xbf16>, vector<8x32xf32> -> vector<8x32xf32>
    %97 = tpu.concatenate %20, %43, %66, %89 in 1 : vector<8x1xf32>, vector<8x1xf32>, vector<8x1xf32>, vector<8x1xf32> -> vector<8x4xf32>
    %98 = tpu.concatenate %25, %48, %71, %94 in 1 : vector<8x1xf32>, vector<8x1xf32>, vector<8x1xf32>, vector<8x1xf32> -> vector<8x4xf32>
    %99 = arith.subf %3, %97 : vector<8x4xf32>
    %100 = math.exp %99 : vector<8x4xf32>
    %c0_56 = arith.constant 0 : index
    %c0_57 = arith.constant 0 : index
    %101 = vector.load %arg7[%c0_56, %c0_57] : memref<8x4xf32, #tpu.memory_space<vmem>>, vector<8x4xf32>
    tpu.vector_store %arg7[%c0_56, %c0_57], %97 {strides = array<i32>} : memref<8x4xf32, #tpu.memory_space<vmem>>, vector<8x4xf32>,
    %102 = arith.mulf %100, %4 : vector<8x4xf32>
    %103 = arith.addf %102, %98 : vector<8x4xf32>
    %c0_58 = arith.constant 0 : index
    %c0_59 = arith.constant 0 : index
    %104 = vector.load %arg8[%c0_58, %c0_59] : memref<8x4xf32, #tpu.memory_space<vmem>>, vector<8x4xf32>
    tpu.vector_store %arg8[%c0_58, %c0_59], %103 {strides = array<i32>} : memref<8x4xf32, #tpu.memory_space<vmem>>, vector<8x4xf32>,
    %105 = vector.extract_strided_slice %100 {offsets = [0, 0], sizes = [8, 1], strides = [1, 1]} : vector<8x4xf32> to vector<8x1xf32>
    %106 = vector.shape_cast %105 : vector<8x1xf32> to vector<8x1xf32>
    %107 = vector.broadcast %106 : vector<8x1xf32> to vector<8x32xf32>
    %108 = vector.extract_strided_slice %100 {offsets = [0, 1], sizes = [8, 1], strides = [1, 1]} : vector<8x4xf32> to vector<8x1xf32>
    %109 = vector.shape_cast %108 : vector<8x1xf32> to vector<8x1xf32>
    %110 = vector.broadcast %109 : vector<8x1xf32> to vector<8x32xf32>
    %111 = vector.extract_strided_slice %100 {offsets = [0, 2], sizes = [8, 1], strides = [1, 1]} : vector<8x4xf32> to vector<8x1xf32>
    %112 = vector.shape_cast %111 : vector<8x1xf32> to vector<8x1xf32>
    %113 = vector.broadcast %112 : vector<8x1xf32> to vector<8x32xf32>
    %114 = vector.extract_strided_slice %100 {offsets = [0, 3], sizes = [8, 1], strides = [1, 1]} : vector<8x4xf32> to vector<8x1xf32>
    %115 = vector.shape_cast %114 : vector<8x1xf32> to vector<8x1xf32>
    %116 = vector.broadcast %115 : vector<8x1xf32> to vector<8x32xf32>
    %117 = tpu.concatenate %107, %110, %113, %116 in 1 : vector<8x32xf32>, vector<8x32xf32>, vector<8x32xf32>, vector<8x32xf32> -> vector<8x128xf32>
    %118 = tpu.concatenate %27, %50, %73, %96 in 1 : vector<8x32xf32>, vector<8x32xf32>, vector<8x32xf32>, vector<8x32xf32> -> vector<8x128xf32>
    %c0_60 = arith.constant 0 : index
    %c0_61 = arith.constant 0 : index
    %119 = vector.load %arg9[%c0_60, %c0_61] : memref<8x128xf32, #tpu.memory_space<vmem>>, vector<8x128xf32>
    %120 = arith.mulf %117, %119 : vector<8x128xf32>
    %121 = arith.addf %120, %118 : vector<8x128xf32>
    %c0_62 = arith.constant 0 : index
    %c0_63 = arith.constant 0 : index
    %122 = vector.load %arg9[%c0_62, %c0_63] : memref<8x128xf32, #tpu.memory_space<vmem>>, vector<8x128xf32>
    tpu.vector_store %arg9[%c0_62, %c0_63], %121 {strides = array<i32>} : memref<8x128xf32, #tpu.memory_space<vmem>>, vector<8x128xf32>,
    %c0_i32_64 = arith.constant 0 : i32
    %123 = arith.cmpi eq, %arg2, %c0_i32_64 : i32
    %124 = arith.extui %123 : i1 to i32
    %c0_i32_65 = arith.constant 0 : i32
    %125 = arith.cmpi ne, %124, %c0_i32_65 : i32
    scf.if %125 {
      %c0_66 = arith.constant 0 : index
      %c0_67 = arith.constant 0 : index
      %126 = vector.load %arg8[%c0_66, %c0_67] : memref<8x4xf32, #tpu.memory_space<vmem>>, vector<8x4xf32>
      %127 = tpu.reciprocal %126 {approx = true} : vector<8x4xf32> -> vector<8x4xf32>
      %128 = vector.extract_strided_slice %127 {offsets = [0, 0], sizes = [8, 1], strides = [1, 1]} : vector<8x4xf32> to vector<8x1xf32>
      %129 = vector.shape_cast %128 : vector<8x1xf32> to vector<8x1xf32>
      %130 = vector.broadcast %129 : vector<8x1xf32> to vector<8x32xf32>
      %131 = vector.extract_strided_slice %127 {offsets = [0, 1], sizes = [8, 1], strides = [1, 1]} : vector<8x4xf32> to vector<8x1xf32>
      %132 = vector.shape_cast %131 : vector<8x1xf32> to vector<8x1xf32>
      %133 = vector.broadcast %132 : vector<8x1xf32> to vector<8x32xf32>
      %134 = vector.extract_strided_slice %127 {offsets = [0, 2], sizes = [8, 1], strides = [1, 1]} : vector<8x4xf32> to vector<8x1xf32>
      %135 = vector.shape_cast %134 : vector<8x1xf32> to vector<8x1xf32>
      %136 = vector.broadcast %135 : vector<8x1xf32> to vector<8x32xf32>
      %137 = vector.extract_strided_slice %127 {offsets = [0, 3], sizes = [8, 1], strides = [1, 1]} : vector<8x4xf32> to vector<8x1xf32>
      %138 = vector.shape_cast %137 : vector<8x1xf32> to vector<8x1xf32>
      %139 = vector.broadcast %138 : vector<8x1xf32> to vector<8x32xf32>
      %140 = tpu.concatenate %130, %133, %136, %139 in 1 : vector<8x32xf32>, vector<8x32xf32>, vector<8x32xf32>, vector<8x32xf32> -> vector<8x128xf32>
      %c0_68 = arith.constant 0 : index
      %c0_69 = arith.constant 0 : index
      %141 = vector.load %arg9[%c0_68, %c0_69] : memref<8x128xf32, #tpu.memory_space<vmem>>, vector<8x128xf32>
      %142 = arith.mulf %141, %140 : vector<8x128xf32>
      %c0_70 = arith.constant 0 : index
      %c0_71 = arith.constant 0 : index
      %c0_72 = arith.constant 0 : index
      %143 = vector.load %arg6[%c0_70, %c0_71, %c0_72] : memref<1x8x128xf32, #tpu.memory_space<vmem>>, vector<1x8x128xf32>
      %144 = vector.shape_cast %143 : vector<1x8x128xf32> to vector<8x128xf32>
      %145 = vector.shape_cast %142 : vector<8x128xf32> to vector<1x8x128xf32>
      tpu.vector_store %arg6[%c0_70, %c0_71, %c0_72], %145 {strides = array<i32>} : memref<1x8x128xf32, #tpu.memory_space<vmem>>, vector<1x8x128xf32>,
    } else {
    }
    return
  }
  func.func @transform_0(%arg0: i32, %arg1: i32, %arg2: i32) -> (i32, i32, i32) {
    %c0_i32 = arith.constant 0 : i32
    %c0_i32_0 = arith.constant 0 : i32
    return %arg0, %arg1, %c0_i32 : i32, i32, i32
  }
  func.func @transform_1(%arg0: i32, %arg1: i32, %arg2: i32) -> (i32, i32, i32) {
    %c0_i32 = arith.constant 0 : i32
    %c0_i32_0 = arith.constant 0 : i32
    return %arg0, %arg2, %c0_i32 : i32, i32, i32
  }
  func.func @transform_2(%arg0: i32, %arg1: i32, %arg2: i32) -> (i32, i32, i32) {
    %c0_i32 = arith.constant 0 : i32
    %c0_i32_0 = arith.constant 0 : i32
    return %arg0, %arg2, %c0_i32 : i32, i32, i32
  }
  func.func @transform_3(%arg0: i32, %arg1: i32, %arg2: i32) -> (i32, i32, i32) {
    %c0_i32 = arith.constant 0 : i32
    %c0_i32_0 = arith.constant 0 : i32
    return %arg0, %arg1, %c0_i32 : i32, i32, i32
  }
}

</mosaic_0001>

<bundles_post_ra>
// kernel: tpu_custom_call.1
= control target key start
LH: loop header
LB: loop body
LE: loop exit
PB: predicated region body
PF: predicated region fallthrough
CT: control target
= control target key end

     0   :  { %s1366_s0 = inlined_call_operand.hbm [shape: f32[2,8,128], index: 0, kind: input, shape index: {}]   ;;  %s1367_s1 = inlined_call_operand.hbm [shape: f32[2,8,128], index: 1, kind: input, shape index: {}]   ;;  %s1368_s2 = inlined_call_operand.hbm [shape: f32[2,8,128], index: 2, kind: input, shape index: {}]   ;;  %s1369_s3 = inlined_call_operand.hbm [shape: f32[2,8,128], index: 3, kind: output, shape index: {}]  }
   0x1   :  { %1372 = sst [smem:[#allocation18_spill]] %s1367_s1 }
   0x2   :  { %8 = vsyncpa [#allocation6], 0 }
   0x3   :  { %10 = vsyncpa [#allocation6 + $0x1], 0 }
   0x4   :  { %11 = vsyncpa [#allocation9], 0 }
   0x5   :  { %13 = vsyncpa [#allocation9 + $0x1], 0 }
   0x6   :  { %14 = vsyncpa [#allocation7], 0 }
   0x7   :  { %16 = vsyncpa [#allocation7 + $0x1], 0  ;;  %s1120_s12 = smov 0   ;;  %s1122_s13 = smov 0  }
   0x8   :  { %s1124_s14 = smov 0   ;;  %s1126_s15 = smov 0  }
   0x9   :  { %s1128_s16 = smov 0   ;;  %s1130_s17 = smov 0  }
   0xa LB: > { %1373 = sst [smem:[#allocation15_spill]] %s1085_s16  ;;  %s1151_s18 = sadd.s32 4294967295, %s1089_s17   ;;  %s1089_s17 = sphi %s1130_s17, %s22_s17   ;;  %s1085_s16 = sphi %s1128_s16, %s1385_s16   ;;  %s1081_s15 = sphi %s1126_s15, %s1384_s15   ;;  %s1077_s14 = sphi %s1124_s14, %s1388_s14   ;;  %s1073_s13 = sphi %s1122_s13, %s1387_s13   ;;  %s1069_s12 = sphi %s1120_s12, %s1386_s12  }
   0xb   : > { %s783_s19 = sadd.s32 4294967294, %s1089_s17   ;;  %s41_s20 = sadd.s32 1, %s1085_s16 }
   0xc   : > { %s50_s21 = sadd.s32 1, %s1077_s14  ;;  %p43_p0 = scmp.ge.s32.totalorder %s41_s20, 2 }
   0xd   : > { %p57_p1 = scmp.ne.s32.totalorder %s1077_s14, %s1073_s13  ;;  %p58_p2 = scmp.eq.s32.totalorder %s1089_s17, 0 }
   0xe   : > { %p63_p3 = scmp.ne.s32.totalorder %s1073_s13, %s1069_s12  ;;  %s1390_s20 = smov (%p43_p0, %s41_s20), 0 }
   0xf   : > { %1374 = sst [smem:[#allocation16_spill]] %s1390_s20  ;;  %p1163_p4 = por %p58_p2, %p57_p1 }
  0x10   : > { %p64_p5 = scmp.eq.s32.totalorder %s1151_s18, 0  ;;  %s45_s23 = ssub.s32 %s1085_s16, %s1390_s20 }
  0x11   : > { %p145_p6 = scmp.eq.s32.totalorder %s1151_s18, 1  ;;  %p48_p7 = scmp.eq.s32.totalorder %s45_s23, 0 }
  0x12   : > { %p1171_p8 = por %p64_p5, %p63_p3  ;;  %p151_p10 = scmp.eq.s32.totalorder %s783_s19, 1 }
  0x13   : > { %p1175_p9 = por %p145_p6, %p57_p1  ;;  %p785_p12 = scmp.ge.s32.totalorder %s1089_s17, 2 }
  0x14   : > { %s1180_s26 = scalar_select %p48_p7, %s1077_s14, %s50_s21  }
  0x15   : > { %p1182_p11 = por %p151_p10, %p63_p3  ;;  %p831_p13 = scmp.lt.s32.totalorder %s1089_s17, 2 }
  0x16   : > { %1378 = sst [smem:[#allocation17_spill]] %s1180_s26  ;;  %s171_s28 = sand.u32 1, %s1077_s14  }
  0x17   : > { %s786_s29 = sshll.u32 %s171_s28, 3  ;;  %s787_s30 = sshll.u32 %s1085_s16, 3 }
  0x18   : > { %p1192_p0 = pnand %p831_p13, %p1163_p4  ;;  %s191_s5 = sand.u32 1, %s1089_s17  }
  0x19   : > { %s1381_s1 = sld [smem:[#allocation18_spill]]  ;;  %s195_s10 = scalar_lea.vmem [#allocation8], %s786_s29 }
  0x1a   : > { %s204_s11 = sshll.u32 %s195_s10, 4  ;;  %s192_s19 = scalar_lea.sflag [#allocation9], %s191_s5  ;;  %s205_s11 = int_to_ptr.vmem [resolvable:$true] %s204_s11 }
  0x1b   : > { %p792_p1 = scmp.ge.s32.totalorder %s1089_s17, 1  ;;  %p229_p2 = scmp.lt.s32.totalorder %s1089_s17, 3 }
  0x1c   : > { %s180_s6 = scalar_lea.hbm %s1366_s0, %s787_s30  ;;  %s172_s10 = scalar_lea.sflag [#allocation6], %s171_s28 }
  0x1d   : > { %p1204_p3 = pnand %p792_p1, %p229_p2  ;;  %s182_s7 = sshll.u32 %s180_s6, 4  ;;  %s183_s7 = int_to_ptr.hbm [resolvable:$true] %s182_s7 }
  0x1e   : > { %s215_s16 = scalar_lea.vmem [#allocation10], %s786_s29  ;;  %s1221_s22 = sand.u32 (!%p1204_p3), 1, %s1073_s13  }
  0x1f   : > { %s200_s8 = scalar_lea.hbm %s1381_s1, %s787_s30  ;;  %s224_s26 = sshll.u32 %s215_s16, 4  ;;  %s225_s26 = int_to_ptr.vmem [resolvable:$true] %s224_s26 }
  0x20   : > { %s202_s9 = sshll.u32 %s200_s8, 4  ;;  %s175_s8 = scalar_lea.vmem [#allocation5], %s786_s29  ;;  %s203_s9 = int_to_ptr.hbm [resolvable:$true] %s202_s9 }
  0x21   : > { %823 = dma.hbm_to_vmem [thread:$0]  (!%p1192_p0), %s203_s9, 128, %s205_s11, %s192_s19  }
  0x22   : > { %s184_s1 = sshll.u32 %s175_s8, 4  ;;  %s220_s11 = scalar_lea.hbm %s1368_s2, %s787_s30  ;;  %s185_s1 = int_to_ptr.vmem [resolvable:$true] %s184_s1 }
  0x23   : > { %820 = dma.hbm_to_vmem [thread:$0]  (!%p1192_p0), %s183_s7, 128, %s185_s1, %s172_s10  }
  0x24   : > { %s222_s20 = sshll.u32 %s220_s11, 4  ;;  %233 = sbr.rel (%p1204_p3) target bundleno = 1088 (0x440), region = 32  ;;  %s223_s20 = int_to_ptr.hbm [resolvable:$true] %s222_s20 }
  0x25   : > { %826 = dma.hbm_to_vmem [thread:$0]  (!%p1192_p0), %s223_s20, 128, %s225_s26, %s192_s19  }
  0x26   : > { %s1224_s1 = sshll.u32 (!%p1204_p3), %s1221_s22, 3  ;;  %s236_s28 = scalar_lea.sflag (!%p1204_p3), [#allocation6], %s1221_s22 }
  0x27   : > { %s239_s30 = scalar_lea.vmem (!%p1204_p3), [#allocation5], %s1224_s1 }
  0x29   : > { %1056 = dma.done.wait (%p1171_p8), %s236_s28, 128  }
  0x2a   : > { %1058 = vsyncadd (%p1171_p8), %s236_s28, 4294967168  ;;  %s245_s16 = sand.u32 1, %s1151_s18   ;;  %s249_s26 = scalar_lea.vmem [#allocation8], %s1224_s1 }
  0x2b   : > { %s246_s20 = scalar_lea.sflag [#allocation9], %s245_s16 }
  0x2c   : > { %1060 = dma.done.wait (%p1171_p8), %s246_s20, 256  }
  0x2d   : > { %1062 = vsyncadd (%p1171_p8), %s246_s20, 4294967040  ;;  %vm298_vm0 = vcmask 31744   ;;  %v1091_v0 = vmov -1e+30   ;;  %v307_v1 = vld [vmem:[%s249_s26] sm:$0xff]  ;;  %vm311_vm1 = vcmask 261120  }
  0x2e   : > { %299 = vst.msk [vmem:[#allocation2] sm:$0xff] %vm298_vm0, %v1091_v0  ;;  %v304_v2 = vld [vmem:[%s239_s30] sm:$0xff]  ;;  %v308_v3 = vpack.c.bf16 %v307_v1, %v307_v1  ;;  %vm331_vm2 = vcmask 64512   ;;  %s1092_s18 = smov 64   ;;  %s1093_s24 = smov 32   ;;  %v1095_v10 = vmov 0  }
  0x2f   : > { %v305_v5 = vmul.f32 0.17677669, %v304_v2  ;;  %s1094_s29 = smov 96   ;;  %890 = vset.pattern.permute.xlu1 %v1095_v10  ;;  %s259_s4 = scalar_lea.vmem [#allocation10], %s1224_s1  ;;  %vm351_vm3 = vcmask 1043456   ;;  %v1096_v43 = vmov 1  }
  0x30   : > { %v316_v4 = vsel %vm311_vm1, %v308_v3, 0  ;;  %433 = vrot.lane.b32.xlu2 %v308_v3, %s1092_s18  ;;  %v309_v17 = vld [vmem:[%s259_s4] sm:$0xff]  ;;  %v1097_v44 = vmov 2   ;;  %v1098_v45 = vmov 0.0   ;;  %v1099_v50 = vmov 3   ;;  %s806_s19 = sshll.u32 %s1081_s15, 3 }
  0x31   : > { %325 = vmatpush.bf16.xpose.msra.mxu0 %v316_v4  ;;  %v306_v6 = vpack.c.bf16 %v305_v5, %v305_v5  ;;  %v1257_v18 = vpack.c.bf16 %v309_v17, %v309_v17  ;;  %891 = vset.pattern.permute.xlu2 %v1096_v43  ;;  %300 = vst.msk [vmem:[#allocation3] sm:$0xff] %vm298_vm0, %v1098_v45  ;;  %vm551_vm4 = vcmask 7168   ;;  %vm553_vm5 = vcmask 15360   ;;  %s649_s6 = scalar_lea.hbm %s1369_s3, %s806_s19  ;;  %s292_s7 = scalar_lea.vmem [#allocation11], %s1224_s1 }
  0x32   : > { %892 = vset.pattern.permute.xlu0 %v1097_v44  ;;  %vm555_vm6 = vcmask 23552   ;;  %vm586_vm7 = vcmask 523264   ;;  %vm588_vm8 = vcmask 785408   ;;  %s651_s8 = sshll.u32 %s292_s7, 4  ;;  %s653_s15 = sshll.u32 %s649_s6, 4  ;;  %s652_s8 = int_to_ptr.vmem [resolvable:$true] %s651_s8  ;;  %s654_s15 = int_to_ptr.hbm [resolvable:$true] %s653_s15 }
  0x33   : > { %v353_v19 = vsel %vm351_vm3, %v1257_v18, 0  ;;  %s638_s10 = scalar_lea.sflag [#allocation7], %s1221_s22  ;;  %s1017_s5 = sshra.s32 %s654_s15, 4  ;;  %s1018_s5 = int_to_ptr.hbm [resolvable:$true] %s1017_s5 }
  0x34   : > { %362 = vmatpush.bf16.msra.mxu1 %v353_v19  ;;  %s1019_s9 = scalar_lea.hbm %s1018_s5, 8  ;;  %s1023_s28 = scalar_lea.hbm %s1369_s3, 16 }
  0x35   : > { %v1247_v11 = vld [vmem:[#allocation2] sm:$0xff]  ;;  %p1020_p4 = scmp.ne.s32.totalorder %s1018_s5, %s1019_s9  ;;  %p1024_p7 = scmp.lt.s32.totalorder %s1018_s5, %s1369_s3 }
  0x36   : > { %p1025_p8 = scmp.lt.s32.totalorder %s1023_s28, %s1019_s9 }
  0x37   : > { %p1021_p5 = pnand %p1020_p4, %p1175_p9 }
  0x38   : > { %797 = vmatmul.msk.bf16.vlgmr.msra.gmra.mxu0 %vm311_vm1, %v306_v6  ;;  %493 = vrot.lane.b32.xlu2 %v308_v3, %s1093_s24  ;;  %p1026_p10 = por %p1025_p8, %p1024_p7 }
  0x39   : > { %p1022_p6 = pneg %p1021_p5 }
  0x3b   : > { %p1027_p13 = pnand %p1026_p10, %p1022_p6 }
  0x40   : > { %491 = vrot.lane.b32.xlu2 %v306_v6, %s1093_s24 }
  0x8a   : > { %v434_v16 = vpop.permute.xlu2 %433 }
  0x8b   : > { %v439_v20 = vsel %vm311_vm1, %v434_v16, 0 }
  0x8c   : > { %448 = vmatpush.bf16.xpose.msrb.mxu1 %v439_v20 }
  0x92   : > { %v494_v21 = vpop.permute.xlu2 %493 }
  0x93   : > { %v499_v22 = vsel %vm311_vm1, %v494_v21, 0 }
  0x94   : > { %508 = vmatpush.bf16.xpose.msrb.mxu0 %v499_v22 }
  0x9a   : > { %v492_v23 = vpop.permute.xlu2 %491 }
  0x9b   : > { %803 = vmatmul.msk.bf16.vlgmr.msrb.gmra.mxu0 %vm311_vm1, %v492_v23 }
  0xb5   : > { %v327_v7 = vpop.f32.mrf.mxu0 }
  0xb6   : > { %v332_v8 = vsel %vm331_vm2, %v327_v7, -inf }
  0xb7   : > { %333 = vmax.xlane.f32.xlu0 %v332_v8 }
  0xbd   : > { %v329_v9 = vpop.f32.mrf.mxu0 }
  0xcb   : > { %372 = vrot.lane.b32.xlu0 %v308_v3, %s1094_s29 }
 0x118   : > { %v510_v31 = vpop.f32.mrf.mxu0 }
 0x119   : > { %v514_v32 = vsel %vm331_vm2, %v510_v31, -inf }
 0x11a   : > { %515 = vmax.xlane.f32.xlu0 %v514_v32 }
 0x120   : > { %v512_v33 = vpop.f32.mrf.mxu0 }
 0x12a   : > { %v334_v12 = vpop.xlane.xlu0 %333 }
 0x12b   : > { %v1250_v13 = vmax.f32 %v1247_v11, %v334_v12 }
 0x12d   : > { %338 = vperm.xlu1 %890, %v1250_v13  }
 0x135   : > { %369 = vrot.lane.b32.xlu1 %v306_v6, %s1094_s29 }
 0x136   : > { %895 = vset.pattern.permute.xlu1 %v1096_v43 }
 0x13d   : > { %431 = vrot.lane.b32.xlu1 %v306_v6, %s1092_s18  ;;  %v373_v14 = vpop.permute.xlu0 %372 }
 0x13e   : > { %v378_v15 = vsel %vm311_vm1, %v373_v14, 0 }
 0x13f   : > { %387 = vmatpush.bf16.xpose.msra.mxu2 %v378_v15 }
 0x18d   : > { %v516_v48 = vpop.xlane.xlu0 %515 }
 0x18e   : > { %v517_v49 = vmax.f32 %v1247_v11, %v516_v48 }
 0x19f   : > { %v339_v24 = vpop.permute.xlu1 %338 }
 0x1a0   : > { %v341_v25 = vsub.f32 %v327_v7, %v339_v24 }
 0x1a2   : > { %v342_v26 = vmul.f32 1.442695, %v341_v25 }
 0x1a4   : > { %901 = vpow2.f32 %v342_v26  ;;  %v303_v26 = vld [vmem:[#allocation3] sm:$0xff] }
 0x1a7   : > { %v370_v27 = vpop.permute.xlu1 %369 }
 0x1a8   : > { %799 = vmatmul.msk.bf16.vlgmr.msra.gmra.mxu2 %vm311_vm1, %v370_v27 }
 0x1aa   : > { %v902_v28 = vpop.eup %901 }
 0x1ab   : > { %v347_v29 = vpack.c.bf16 %v902_v28, %v902_v28  ;;  %v344_v42 = vsel %vm331_vm2, %v902_v28, 0.0 }
 0x1ad   : > { %798 = vmatmul.msk.bf16.vlgmr.msra.gmra.mxu1 %vm331_vm2, %v347_v29 }
 0x1af   : > { %v432_v30 = vpop.permute.xlu1 %431 }
 0x1bd   : > { %801 = vmatmul.msk.bf16.vlgmr.msrb.gmra.mxu1 %vm311_vm1, %v432_v30 }
 0x22a   : > { %v1268_v34 = vpop.f32.mrf.mxu1 }
 0x22b   : > { %v389_v35 = vpop.f32.mrf.mxu2 }
 0x22c   : > { %v393_v36 = vsel %vm331_vm2, %v389_v35, -inf }
 0x22d   : > { %394 = vmax.xlane.f32.xlu1 %v393_v36 }
 0x232   : > { %v366_v37 = vpop.f32.mrf.mxu1 }
 0x233   : > { %v391_v38 = vpop.f32.mrf.mxu2 }
 0x23a   : > { %v1271_v39 = vpop.f32.mrf.mxu1 }
 0x23b   : > { %v454_v40 = vsel %vm331_vm2, %v1271_v39, -inf }
 0x23c   : > { %455 = vmax.xlane.f32.xlu2 %v454_v40 }
 0x242   : > { %v452_v41 = vpop.f32.mrf.mxu1 }
 0x246   : > { %410 = vrot.lane.b32.xlu1 %v1257_v18, %s1094_s29 }
 0x24e   : > { %470 = vrot.lane.b32.xlu1 %v1257_v18, %s1092_s18 }
 0x278   : > { %345 = vadd.xlane.f32.xlu1 %v344_v42 }
 0x2a0   : > { %v395_v46 = vpop.xlane.xlu1 %394 }
 0x2a1   : > { %v396_v47 = vmax.f32 %v1247_v11, %v395_v46 }
 0x2a3   : > { %399 = vperm.xlu2 %891, %v396_v47   ;;  %v552_v53 = vsel %vm551_vm4, %v1250_v13, %v396_v47 }
 0x2ab   : > { %893 = vset.pattern.permute.xlu2 %v1099_v50 }
 0x2ac   : > { %520 = vperm.xlu2 %893, %v517_v49  }
 0x2af   : > { %v456_v51 = vpop.xlane.xlu2 %455 }
 0x2b0   : > { %v457_v52 = vmax.f32 %v1247_v11, %v456_v51 }
 0x2b2   : > { %v554_v54 = vsel %vm553_vm5, %v552_v53, %v457_v52  ;;  %460 = vperm.xlu0 %892, %v457_v52  }
 0x2b3   : > { %v556_v55 = vsel %vm555_vm6, %v554_v54, %v517_v49 }
 0x2b4   : > { %564 = vst.msk [vmem:[#allocation2] sm:$0xff] %vm298_vm0, %v556_v55  ;;  %530 = vrot.lane.b32.xlu2 %v1257_v18, %s1093_s24  ;;  %v560_v12 = vsub.f32 %v1247_v11, %v556_v55 }
 0x2b5   : > { %894 = vset.pattern.permute.xlu2 %v1095_v10 }
 0x2b6   : > { %v561_v13 = vmul.f32 1.442695, %v560_v12 }
 0x2b8   : > { %v411_v56 = vpop.permute.xlu1 %410 }
 0x2b9   : > { %v416_v57 = vsel %vm351_vm3, %v411_v56, 0 }
 0x2ba   : > { %425 = vmatpush.bf16.msra.mxu3 %v416_v57 }
 0x2c0   : > { %v471_v61 = vpop.permute.xlu1 %470 }
 0x2c1   : > { %v476_v62 = vsel %vm351_vm3, %v471_v61, 0 }
 0x2c2   : > { %485 = vmatpush.bf16.msrb.mxu3 %v476_v62 }
 0x2eb   : > { %v346_v23 = vpop.xlane.xlu1 %345 }
 0x2fd   : > { %v400_v58 = vpop.permute.xlu2 %399 }
 0x2fe   : > { %v402_v59 = vsub.f32 %v389_v35, %v400_v58 }
 0x300   : > { %v403_v60 = vmul.f32 1.442695, %v402_v59 }
 0x302   : > { %903 = vpow2.f32 %v403_v60 }
 0x306   : > { %v521_v63 = vpop.permute.xlu2 %520 }
 0x307   : > { %v523_v0 = vsub.f32 %v510_v31, %v521_v63 }
 0x308   : > { %v904_v1 = vpop.eup %903 }
 0x309   : > { %v524_v2 = vmul.f32 1.442695, %v523_v0  ;;  %v405_v3 = vsel %vm331_vm2, %v904_v1, 0.0  ;;  %v408_v4 = vpack.c.bf16 %v904_v1, %v904_v1 }
 0x30a   : > { %406 = vadd.xlane.f32.xlu2 %v405_v3 }
 0x30b   : > { %905 = vpow2.f32 %v524_v2  ;;  %800 = vmatmul.msk.bf16.vlgmr.msra.gmra.mxu3 %vm331_vm2, %v408_v4 }
 0x30c   : > { %907 = vpow2.f32 %v561_v13 }
 0x30e   : > { %v531_v5 = vpop.permute.xlu2 %530 }
 0x30f   : > { %v536_v6 = vsel %vm351_vm3, %v531_v5, 0 }
 0x310   : > { %545 = vmatpush.bf16.msrb.mxu2 %v536_v6 }
 0x311   : > { %v906_v7 = vpop.eup %905 }
 0x312   : > { %v526_v8 = vsel %vm331_vm2, %v906_v7, 0.0  ;;  %v529_v9 = vpack.c.bf16 %v906_v7, %v906_v7  ;;  %v908_v14 = vpop.eup %907 }
 0x313   : > { %527 = vadd.xlane.f32.xlu1 %v526_v8  ;;  %v565_v31 = vmul.f32 %v908_v14, %v303_v26 }
 0x314   : > { %804 = vmatmul.msk.bf16.vlgmr.msrb.gmra.mxu2 %vm331_vm2, %v529_v9 }
 0x322   : > { %570 = vperm.xlu2 %894, %v908_v14  }
 0x324   : > { %v461_v15 = vpop.permute.xlu0 %460 }
 0x325   : > { %v463_v16 = vsub.f32 %v1271_v39, %v461_v15 }
 0x327   : > { %v464_v17 = vmul.f32 1.442695, %v463_v16 }
 0x329   : > { %909 = vpow2.f32 %v464_v17 }
 0x32a   : > { %896 = vset.pattern.permute.xlu2 %v1099_v50 }
 0x32b   : > { %582 = vperm.xlu2 %896, %v908_v14  }
 0x32c   : > { %574 = vperm.xlu1 %895, %v908_v14  }
 0x32f   : > { %v910_v18 = vpop.eup %909 }
 0x330   : > { %v466_v19 = vsel %vm331_vm2, %v910_v18, 0.0  ;;  %v469_v11 = vpack.c.bf16 %v910_v18, %v910_v18 }
 0x331   : > { %467 = vadd.xlane.f32.xlu0 %v466_v19 }
 0x332   : > { %802 = vmatmul.msk.bf16.vlgmr.msrb.gmra.mxu3 %vm331_vm2, %v469_v11 }
 0x333   : > { %898 = vset.pattern.permute.xlu2 %v1097_v44 }
 0x345   : > { %578 = vperm.xlu0 %892, %v908_v14  }
 0x34d   : > { %897 = vset.pattern.permute.xlu0 %v1095_v10 }
 0x37d   : > { %v407_v25 = vpop.xlane.xlu2 %406 }
 0x37e   : > { %v557_v27 = vsel %vm551_vm4, %v346_v23, %v407_v25 }
 0x385   : > { %v571_v38 = vpop.permute.xlu2 %570 }
 0x386   : > { %v528_v29 = vpop.xlane.xlu1 %527 }
 0x38d   : > { %v583_v41 = vpop.permute.xlu2 %582 }
 0x38e   : > { %v427_v20 = vpop.f32.mrf.mxu3 }
 0x38f   : > { %591 = vrot.lane.b32.xlu0 %v427_v20, %s1093_s24 }
 0x396   : > { %v429_v21 = vpop.f32.mrf.mxu3 }
 0x397   : > { %v547_v22 = vpop.f32.mrf.mxu2 }
 0x398   : > { %599 = vrot.lane.b32.xlu2 %v547_v22, %s1094_s29 }
 0x39e   : > { %v575_v39 = vpop.permute.xlu1 %574 }
 0x39f   : > { %v549_v24 = vpop.f32.mrf.mxu2  ;;  %v585_v44 = vsel %vm311_vm1, %v571_v38, %v575_v39 }
 0x3a4   : > { %v468_v28 = vpop.xlane.xlu0 %467 }
 0x3a5   : > { %v558_v30 = vsel %vm553_vm5, %v557_v27, %v468_v28 }
 0x3a6   : > { %v559_v10 = vsel %vm555_vm6, %v558_v30, %v528_v29 }
 0x3a7   : > { %v566_v32 = vadd.f32 %v565_v31, %v559_v10 }
 0x3a9   : > { %567 = vst.msk [vmem:[#allocation3] sm:$0xff] %vm298_vm0, %v566_v32 }
 0x3b0   : > { %v612_v33 = vld [vmem:[#allocation3] sm:$0xff] }
 0x3b1   : > { %911 = vrcp.f32 %v612_v33 }
 0x3b5   : > { %v487_v35 = vpop.f32.mrf.mxu3 }
 0x3b6   : > { %595 = vrot.lane.b32.xlu1 %v487_v35, %s1092_s18 }
 0x3b7   : > { %v912_v36 = vpop.eup %911  ;;  %v579_v40 = vpop.permute.xlu0 %578 }
 0x3b8   : > { %624 = vperm.xlu2 %898, %v912_v36   ;;  %616 = vperm.xlu0 %897, %v912_v36   ;;  %v587_v47 = vsel %vm586_vm7, %v585_v44, %v579_v40 }
 0x3bd   : > { %v489_v37 = vpop.f32.mrf.mxu3 }
 0x3be   : > { %620 = vperm.xlu1 %895, %v912_v36  }
 0x3c0   : > { %900 = vset.pattern.permute.xlu0 %v1099_v50 }
 0x3c6   : > { %899 = vset.pattern.permute.xlu1 %v1099_v50  ;;  %v589_v50 = vsel %vm588_vm8, %v587_v47, %v583_v41 }
 0x3c7   : > { %628 = vperm.xlu1 %899, %v912_v36   ;;  %v606_v54 = vmul.f32 0.0, %v589_v50 }
 0x3f2   : > { %v600_v45 = vpop.permute.xlu2 %599 }
 0x401   : > { %v592_v43 = vpop.permute.xlu0 %591 }
 0x402   : > { %v602_v48 = vsel %vm311_vm1, %v1268_v34, %v592_v43 }
 0x412   : > { %v625_v55 = vpop.permute.xlu2 %624 }
 0x428   : > { %v596_v42 = vpop.permute.xlu1 %595 }
 0x429   : > { %v603_v49 = vsel %vm586_vm7, %v602_v48, %v596_v42 }
 0x42a   : > { %v617_v51 = vpop.permute.xlu0 %616  ;;  %v604_v52 = vsel %vm588_vm8, %v603_v49, %v600_v45 }
 0x42b   : > { %v607_v34 = vadd.f32 %v606_v54, %v604_v52 }
 0x430   : > { %v621_v46 = vpop.permute.xlu1 %620 }
 0x431   : > { %v631_v53 = vsel %vm311_vm1, %v617_v51, %v621_v46 }
 0x432   : > { %v632_v56 = vsel %vm586_vm7, %v631_v53, %v625_v55 }
 0x439   : > { %v629_v57 = vpop.permute.xlu1 %628 }
 0x43a   : > { %v633_v58 = vsel %vm588_vm8, %v632_v56, %v629_v57 }
 0x43b   : > { %v635_v59 = vmul.f32 %v633_v58, %v607_v34 }
 0x43d   : > { %636 = vst [vmem:[%s292_s7] sm:$0xff] %v635_v59 }
 0x43e   : > { %1030 = shalt.err (!%p1027_p13)
}
 0x43f   : > { %815 = dma.vmem_to_hbm [thread:$0]  (%p1175_p9), %s652_s8, 128, %s654_s15, %s638_s10  }
 0x440 PF: > { %s665_s22 = sand.u32 1, %s1069_s12   ;;  %p828_p0 = pnand %p785_p12, %p1182_p11 }
 0x441   : > { %s666_s20 = scalar_lea.sflag [#allocation7], %s665_s22 }
 0x442   : > { %p829_p1 = pneg %p828_p0 }
 0x444   : > { %1064 = dma.done.wait (%p829_p1), %s666_s20, 128  }
 0x445   : > { %1066 = vsyncadd (%p829_p1), %s666_s20, 4294967168  ;;  %s22_s17 = sadd.s32 1, %s1089_s17   ;;  %s1383_s26 = sld [smem:[#allocation17_spill]] }
 0x446   : > { %p19_p2 = scmp.ge.s32.totalorder %s22_s17, 4   ;;  %s1384_s15 = sld [smem:[#allocation15_spill]] }
 0x447   : > { %s1385_s16 = sld [smem:[#allocation16_spill]]  ;;  %s1386_s12 = smov %s1073_s13 }
 0x448   : > { %s1387_s13 = smov %s1077_s14  ;;  %21 = sbr.rel (!%p19_p2) target bundleno = 10 (0xa), region = 109 }
 0x44b   : > { %s1388_s14 = smov %s1383_s26 }
 0x44d   :  { %672 = vsyncpa [#allocation6], 1 }
 0x44e   :  { %674 = vsyncpa [#allocation6 + $0x1], 1 }
 0x44f   :  { %675 = vsyncpa [#allocation9], 1 }
 0x450   :  { %677 = vsyncpa [#allocation9 + $0x1], 1 }
 0x451   :  { %678 = vsyncpa [#allocation7], 1 }
 0x452   :  { %680 = vsyncpa [#allocation7 + $0x1], 1 }

</bundles_post_ra>
